<compile_context>
chip_gen: v7x
topology: tpu7x:2x2x1
jax: 0.10.0
libtpu: 0.0.40
codegen_flags: <defaults>
</compile_context>

<pallas_src>
import functools
import math

import jax
import jax.numpy as jnp
from jax.experimental import pallas as pl
from jax.experimental.pallas import tpu as pltpu

# ----------------- scaled-down config -----------------
D_MODEL = 32          # bart_model.config.d_model (scaled down from 1024)
VOCAB   = 64          # bart_model.config.vocab_size (scaled down)
FF_DIM  = 4 * D_MODEL
PATCH   = 4
IMG_C, IMG_H, IMG_W = 3, 16, 16   # stands in for 3x224x224
IGNORE_INDEX = -100               # torch CrossEntropyLoss default ignore_index


# ----------------- fused Pallas kernel -----------------
def _fused_decoder_kernel(
    # batched inputs (block = one batch row)
    patches_ref, dec_emb_ref, mask_ref, rating_ref, labels_ref,
    # weights / biases (VMEM-resident across the grid: constant index_map)
    patch_w_ref, patch_b_ref, rating_w_ref, rating_b_ref,
    wq_ref, bq_ref, wk_ref, bk_ref, wv_ref, bv_ref, wo_ref, bo_ref,
    w_ff1_ref, b_ff1_ref, w_ff2_ref, b_ff2_ref, lm_w_ref, lm_b_ref,
    # outputs: per-batch CE partials
    nll_ref, cnt_ref,
    *, scale):
    f32 = jnp.float32
    bf16 = jnp.bfloat16

    # ---- image patch embedding (Resnet stand-in) ----
    patches = patches_ref[0]                                            # [ES, PD] bf16
    enc = jnp.dot(patches, patch_w_ref[...], preferred_element_type=f32)
    enc = enc + patch_b_ref[...]                                        # [ES, D] f32
    enc_bf = enc.astype(bf16)

    # ---- decoder token embedding + rating projection (rating input dim == 1) ----
    rating_emb = rating_ref[0] * rating_w_ref[...] + rating_b_ref[...]  # [1, D] f32
    dec_h = dec_emb_ref[0].astype(f32) + rating_emb                     # [T, D] f32
    dec_bf = dec_h.astype(bf16)

    # ---- cross-attention projections (bf16 MXU inputs, f32 accumulate) ----
    q = jnp.dot(dec_bf, wq_ref[...], preferred_element_type=f32) + bq_ref[...]   # [T, D]
    k = jnp.dot(enc_bf, wk_ref[...], preferred_element_type=f32) + bk_ref[...]   # [ES, D]
    v = jnp.dot(enc_bf, wv_ref[...], preferred_element_type=f32) + bv_ref[...]   # [ES, D]

    # ---- masked softmax attention ----
    s = jax.lax.dot_general(q.astype(bf16), k.astype(bf16),
                            (((1,), (1,)), ((), ())),
                            preferred_element_type=f32) * scale          # [T, ES]
    s = s + mask_ref[0]                                                  # additive mask [1, ES]
    s = s - jnp.max(s, axis=-1, keepdims=True)
    p = jnp.exp(s)
    p = p * pl.reciprocal(jnp.sum(p, axis=-1, keepdims=True), approx=False)
    attn = jnp.dot(p.astype(bf16), v.astype(bf16), preferred_element_type=f32)   # [T, D]

    # ---- out projection + residual ----
    h = dec_h + jnp.dot(attn.astype(bf16), wo_ref[...],
                        preferred_element_type=f32) + bo_ref[...]        # [T, D] f32

    # ---- GELU FFN + residual (f32 VPU math) ----
    ff = jnp.dot(h.astype(bf16), w_ff1_ref[...], preferred_element_type=f32) + b_ff1_ref[...]
    ff = jax.nn.gelu(ff)
    ff = jnp.dot(ff.astype(bf16), w_ff2_ref[...], preferred_element_type=f32) + b_ff2_ref[...]
    h = h + ff                                                           # [T, D] f32

    # ---- LM head ----
    logits = jnp.dot(h.astype(bf16), lm_w_ref[...],
                     preferred_element_type=f32) + lm_b_ref[...]         # [T, V] f32

    # ---- cross entropy with ignore_index=-100 (torch semantics) ----
    lab = labels_ref[0]                                                  # [T, 1] int32
    valid = (lab >= 0).astype(f32)                                       # ignore padded targets
    safe_lab = jnp.where(lab >= 0, lab, 0)
    m = jnp.max(logits, axis=-1, keepdims=True)
    lse = m + jnp.log(jnp.sum(jnp.exp(logits - m), axis=-1, keepdims=True))
    vocab_ids = jax.lax.broadcasted_iota(jnp.int32, logits.shape, 1)
    onehot = (vocab_ids == safe_lab).astype(f32)
    true_logit = jnp.sum(logits * onehot, axis=-1, keepdims=True)
    nll = (lse - true_logit) * valid                                     # [T, 1]
    nll_ref[0] = jnp.sum(nll, keepdims=True)                             # [1, 1]
    cnt_ref[0] = jnp.sum(valid, keepdims=True)                           # [1, 1]


# ----------------- parameters (deterministic, synthetic) -----------------
def init_params(key):
    def nrm(k, shape, scale=0.02):
        return scale * jax.random.normal(k, shape, dtype=jnp.float32)

    ks = jax.random.split(key, 12)
    patch_dim = IMG_C * PATCH * PATCH
    return {
        "patch_w":   nrm(ks[0], (patch_dim, D_MODEL)),
        "patch_b":   jnp.zeros((1, D_MODEL), jnp.float32),
        "tok_emb":   nrm(ks[1], (VOCAB, D_MODEL)),
        "rating_w":  nrm(ks[2], (1, D_MODEL)),
        "rating_b":  jnp.zeros((1, D_MODEL), jnp.float32),
        "wq": nrm(ks[3], (D_MODEL, D_MODEL)), "bq": jnp.zeros((1, D_MODEL), jnp.float32),
        "wk": nrm(ks[4], (D_MODEL, D_MODEL)), "bk": jnp.zeros((1, D_MODEL), jnp.float32),
        "wv": nrm(ks[5], (D_MODEL, D_MODEL)), "bv": jnp.zeros((1, D_MODEL), jnp.float32),
        "wo": nrm(ks[6], (D_MODEL, D_MODEL)), "bo": jnp.zeros((1, D_MODEL), jnp.float32),
        "w_ff1": nrm(ks[7], (D_MODEL, FF_DIM)), "b_ff1": jnp.zeros((1, FF_DIM), jnp.float32),
        "w_ff2": nrm(ks[8], (FF_DIM, D_MODEL)), "b_ff2": jnp.zeros((1, D_MODEL), jnp.float32),
        "lm_head_w": nrm(ks[9], (D_MODEL, VOCAB)),
        "lm_head_b": jnp.zeros((1, VOCAB), jnp.float32),
    }


# ----------------- forward (mirrors ImgSupervised.forward) -----------------
def img_supervised_forward(params, input_imgs, input_imgs_mask=None,
                           decoder_input_ids=None, labels=None):
    f32, bf16 = jnp.float32, jnp.bfloat16
    bsz, max_examples = input_imgs.shape[:2]

    # ---- img_encoder (Resnet stand-in): patchify (XLA glue) ----
    # TODO(synk): fold the im2col rearrangement into the kernel DMA via a
    #             BlockSpec over (nh, nw) so the image never takes the extra
    #             HBM transpose round trip.
    x = input_imgs.reshape(-1, IMG_C, IMG_H, IMG_W)
    N = x.shape[0]
    nh, nw = IMG_H // PATCH, IMG_W // PATCH
    S = nh * nw
    ES = max_examples * S
    PD = IMG_C * PATCH * PATCH
    patches = x.reshape(N, IMG_C, nh, PATCH, nw, PATCH)
    patches = patches.transpose(0, 2, 4, 1, 3, 5).reshape(N, S, PD)
    patches = patches.reshape(bsz, ES, PD).astype(bf16)

    # ---- encoder attention mask -> precomputed additive f32 mask ----
    if input_imgs_mask is not None:
        key_mask = jnp.repeat(input_imgs_mask.astype(f32)[:, :, None], S, axis=2)
    else:
        key_mask = jnp.ones((bsz, max_examples, S), f32)
    mask_add = jnp.where(key_mask > 0, 0.0, -1e9).astype(f32).reshape(bsz, 1, ES)

    rating_diff = jnp.zeros((bsz, 1, 1), f32)

    # ---- decoder token embedding lookup (XLA gather glue) ----
    T = decoder_input_ids.shape[1]
    dec_emb = jnp.take(params["tok_emb"], decoder_input_ids, axis=0).astype(bf16)  # [B,T,D]

    if labels is not None:
        labels3d = labels.reshape(bsz, T, 1).astype(jnp.int32)
    else:
        labels3d = jnp.zeros((bsz, T, 1), jnp.int32)

    scale = 1.0 / math.sqrt(D_MODEL)

    inputs = [
        patches, dec_emb, mask_add, rating_diff, labels3d,
        params["patch_w"].astype(bf16), params["patch_b"],
        params["rating_w"], params["rating_b"],
        params["wq"].astype(bf16), params["bq"],
        params["wk"].astype(bf16), params["bk"],
        params["wv"].astype(bf16), params["bv"],
        params["wo"].astype(bf16), params["bo"],
        params["w_ff1"].astype(bf16), params["b_ff1"],
        params["w_ff2"].astype(bf16), params["b_ff2"],
        params["lm_head_w"].astype(bf16), params["lm_head_b"],
    ]
    NUM_BATCHED = 5

    def batched_spec(shape):
        nd = len(shape)
        return pl.BlockSpec((1,) + tuple(shape[1:]),
                            lambda b, _nd=nd: (b,) + (0,) * (_nd - 1))

    def shared_spec(shape):
        nd = len(shape)
        return pl.BlockSpec(tuple(shape), lambda b, _nd=nd: (0,) * _nd)

    in_specs = [batched_spec(a.shape) if i < NUM_BATCHED else shared_spec(a.shape)
                for i, a in enumerate(inputs)]

    out_shape = [jax.ShapeDtypeStruct((bsz, 1, 1), f32),   # per-batch NLL sum
                 jax.ShapeDtypeStruct((bsz, 1, 1), f32)]   # per-batch valid count
    out_specs = [pl.BlockSpec((1, 1, 1), lambda b: (b, 0, 0)),
                 pl.BlockSpec((1, 1, 1), lambda b: (b, 0, 0))]

    # Advisory cost estimate so XLA schedules surrounding glue sensibly.
    flops = 2 * bsz * (
        ES * PD * D_MODEL            # patch embed
        + T * D_MODEL * D_MODEL      # q proj
        + 2 * ES * D_MODEL * D_MODEL # k, v proj
        + 2 * T * ES * D_MODEL       # scores + attn@v
        + T * D_MODEL * D_MODEL      # out proj
        + 2 * T * D_MODEL * FF_DIM   # ffn
        + T * D_MODEL * VOCAB)       # lm head
    transcendentals = bsz * (T * ES + T * FF_DIM + T * VOCAB + T)
    bytes_accessed = sum(int(a.size) * a.dtype.itemsize for a in inputs) + 2 * bsz * 4
    cost = pl.CostEstimate(flops=flops, transcendentals=transcendentals,
                           bytes_accessed=bytes_accessed)

    nll_sum, valid_cnt = pl.pallas_call(
        functools.partial(_fused_decoder_kernel, scale=scale),
        out_shape=out_shape,
        grid=(bsz,),
        in_specs=in_specs,
        out_specs=out_specs,
        compiler_params=pltpu.CompilerParams(
            dimension_semantics=("parallel",)),   # v7x: batch split over 2 TCs
        cost_estimate=cost,
    )(*inputs)

    lm_loss = None
    if labels is not None:
        total = jnp.sum(nll_sum)
        count = jnp.maximum(jnp.sum(valid_cnt), 1.0)
        lm_loss = total / count
    return (lm_loss,)


# ----------------- main -----------------
if __name__ == "__main__":
    key = jax.random.PRNGKey(0)
    k_par, k_img, k_dec, k_lab = jax.random.split(key, 4)

    params = init_params(k_par)

    bsz, max_examples, tgt_len = 2, 2, 8
    input_imgs = jax.random.normal(
        k_img, (bsz, max_examples, IMG_C, IMG_H, IMG_W), dtype=jnp.float32)
    input_imgs_mask = jnp.array([[1.0, 1.0], [1.0, 0.0]], dtype=jnp.float32)
    decoder_input_ids = jax.random.randint(k_dec, (bsz, tgt_len), 0, VOCAB, jnp.int32)
    labels = jax.random.randint(k_lab, (bsz, tgt_len), 0, VOCAB, jnp.int32)

    fwd = jax.jit(img_supervised_forward)
    (lm_loss,) = fwd(params, input_imgs, input_imgs_mask, decoder_input_ids, labels)
    lm_loss = jax.block_until_ready(lm_loss)
    assert lm_loss.shape == () and jnp.isfinite(lm_loss)
    print("KERNEL_OK")
</pallas_src>

<mosaic_0001>
module attributes {stable_mosaic.version = 11 : i64} {
  func.func @_fused_decoder_kernel(%arg0: i32, %arg1: memref<1x32x48xbf16, #tpu.memory_space<vmem>>, %arg2: memref<1x8x32xbf16, #tpu.memory_space<vmem>>, %arg3: memref<1x1x32xf32, #tpu.memory_space<vmem>>, %arg4: memref<1x1x1xf32, #tpu.memory_space<vmem>>, %arg5: memref<1x8x1xi32, #tpu.memory_space<vmem>>, %arg6: memref<48x32xbf16, #tpu.memory_space<vmem>>, %arg7: memref<1x32xf32, #tpu.memory_space<vmem>>, %arg8: memref<1x32xf32, #tpu.memory_space<vmem>>, %arg9: memref<1x32xf32, #tpu.memory_space<vmem>>, %arg10: memref<32x32xbf16, #tpu.memory_space<vmem>>, %arg11: memref<1x32xf32, #tpu.memory_space<vmem>>, %arg12: memref<32x32xbf16, #tpu.memory_space<vmem>>, %arg13: memref<1x32xf32, #tpu.memory_space<vmem>>, %arg14: memref<32x32xbf16, #tpu.memory_space<vmem>>, %arg15: memref<1x32xf32, #tpu.memory_space<vmem>>, %arg16: memref<32x32xbf16, #tpu.memory_space<vmem>>, %arg17: memref<1x32xf32, #tpu.memory_space<vmem>>, %arg18: memref<32x128xbf16, #tpu.memory_space<vmem>>, %arg19: memref<1x128xf32, #tpu.memory_space<vmem>>, %arg20: memref<128x32xbf16, #tpu.memory_space<vmem>>, %arg21: memref<1x32xf32, #tpu.memory_space<vmem>>, %arg22: memref<32x64xbf16, #tpu.memory_space<vmem>>, %arg23: memref<1x64xf32, #tpu.memory_space<vmem>>, %arg24: memref<1x1x1xf32, #tpu.memory_space<vmem>>, %arg25: memref<1x1x1xf32, #tpu.memory_space<vmem>>) attributes {dimension_semantics = [#tpu.dimension_semantics<parallel>], iteration_bounds = array<i64: 2>, scalar_prefetch = 0 : i64, scratch_operands = 0 : i64, tpu.core_type = #tpu.core_type<tc>, window_params = [{transform_indices = @transform_0, window_bounds = array<i64: 1, 32, 48>}, {transform_indices = @transform_1, window_bounds = array<i64: 1, 8, 32>}, {transform_indices = @transform_2, window_bounds = array<i64: 1, 1, 32>}, {transform_indices = @transform_3, window_bounds = array<i64: 1, 1, 1>}, {transform_indices = @transform_4, window_bounds = array<i64: 1, 8, 1>}, {pipeline_mode = #tpu.pipeline_mode<synchronous>, transform_indices = @transform_5, window_bounds = array<i64: 48, 32>}, {pipeline_mode = #tpu.pipeline_mode<synchronous>, transform_indices = @transform_6, window_bounds = array<i64: 1, 32>}, {pipeline_mode = #tpu.pipeline_mode<synchronous>, transform_indices = @transform_7, window_bounds = array<i64: 1, 32>}, {pipeline_mode = #tpu.pipeline_mode<synchronous>, transform_indices = @transform_8, window_bounds = array<i64: 1, 32>}, {pipeline_mode = #tpu.pipeline_mode<synchronous>, transform_indices = @transform_9, window_bounds = array<i64: 32, 32>}, {pipeline_mode = #tpu.pipeline_mode<synchronous>, transform_indices = @transform_10, window_bounds = array<i64: 1, 32>}, {pipeline_mode = #tpu.pipeline_mode<synchronous>, transform_indices = @transform_11, window_bounds = array<i64: 32, 32>}, {pipeline_mode = #tpu.pipeline_mode<synchronous>, transform_indices = @transform_12, window_bounds = array<i64: 1, 32>}, {pipeline_mode = #tpu.pipeline_mode<synchronous>, transform_indices = @transform_13, window_bounds = array<i64: 32, 32>}, {pipeline_mode = #tpu.pipeline_mode<synchronous>, transform_indices = @transform_14, window_bounds = array<i64: 1, 32>}, {pipeline_mode = #tpu.pipeline_mode<synchronous>, transform_indices = @transform_15, window_bounds = array<i64: 32, 32>}, {pipeline_mode = #tpu.pipeline_mode<synchronous>, transform_indices = @transform_16, window_bounds = array<i64: 1, 32>}, {pipeline_mode = #tpu.pipeline_mode<synchronous>, transform_indices = @transform_17, window_bounds = array<i64: 32, 128>}, {pipeline_mode = #tpu.pipeline_mode<synchronous>, transform_indices = @transform_18, window_bounds = array<i64: 1, 128>}, {pipeline_mode = #tpu.pipeline_mode<synchronous>, transform_indices = @transform_19, window_bounds = array<i64: 128, 32>}, {pipeline_mode = #tpu.pipeline_mode<synchronous>, transform_indices = @transform_20, window_bounds = array<i64: 1, 32>}, {pipeline_mode = #tpu.pipeline_mode<synchronous>, transform_indices = @transform_21, window_bounds = array<i64: 32, 64>}, {pipeline_mode = #tpu.pipeline_mode<synchronous>, transform_indices = @transform_22, window_bounds = array<i64: 1, 64>}, {transform_indices = @transform_23, window_bounds = array<i64: 1, 1, 1>}, {transform_indices = @transform_24, window_bounds = array<i64: 1, 1, 1>}]} {
    %c0 = arith.constant 0 : index
    %c0_0 = arith.constant 0 : index
    %c0_1 = arith.constant 0 : index
    %0 = vector.load %arg1[%c0, %c0_0, %c0_1] : memref<1x32x48xbf16, #tpu.memory_space<vmem>>, vector<1x32x48xbf16>
    %1 = vector.shape_cast %0 : vector<1x32x48xbf16> to vector<32x48xbf16>
    %c0_2 = arith.constant 0 : index
    %c0_3 = arith.constant 0 : index
    %2 = vector.load %arg6[%c0_2, %c0_3] : memref<48x32xbf16, #tpu.memory_space<vmem>>, vector<48x32xbf16>
    %cst = arith.constant dense<0.000000e+00> : vector<32x32xf32>
    %3 = tpu.matmul %1, %2, %cst {dimension_numbers = #tpu.dot_dimension_numbers<[1], [0], [0], [1], [0, 0, 1, 1], [], []>} : vector<32x48xbf16>, vector<48x32xbf16>, vector<32x32xf32> -> vector<32x32xf32>
    %c0_4 = arith.constant 0 : index
    %c0_5 = arith.constant 0 : index
    %4 = vector.load %arg7[%c0_4, %c0_5] : memref<1x32xf32, #tpu.memory_space<vmem>>, vector<1x32xf32>
    %5 = vector.broadcast %4 : vector<1x32xf32> to vector<32x32xf32>
    %6 = arith.addf %3, %5 : vector<32x32xf32>
    %7 = arith.truncf %6 : vector<32x32xf32> to vector<32x32xbf16>
    %c0_6 = arith.constant 0 : index
    %c0_7 = arith.constant 0 : index
    %c0_8 = arith.constant 0 : index
    %8 = vector.load %arg4[%c0_6, %c0_7, %c0_8] : memref<1x1x1xf32, #tpu.memory_space<vmem>>, vector<1x1x1xf32>
    %9 = vector.shape_cast %8 : vector<1x1x1xf32> to vector<1x1xf32>
    %c0_9 = arith.constant 0 : index
    %c0_10 = arith.constant 0 : index
    %10 = vector.load %arg8[%c0_9, %c0_10] : memref<1x32xf32, #tpu.memory_space<vmem>>, vector<1x32xf32>
    %11 = vector.broadcast %9 : vector<1x1xf32> to vector<1x32xf32>
    %12 = arith.mulf %11, %10 : vector<1x32xf32>
    %c0_11 = arith.constant 0 : index
    %c0_12 = arith.constant 0 : index
    %13 = vector.load %arg9[%c0_11, %c0_12] : memref<1x32xf32, #tpu.memory_space<vmem>>, vector<1x32xf32>
    %14 = arith.addf %12, %13 : vector<1x32xf32>
    %c0_13 = arith.constant 0 : index
    %c0_14 = arith.constant 0 : index
    %c0_15 = arith.constant 0 : index
    %15 = vector.load %arg2[%c0_13, %c0_14, %c0_15] : memref<1x8x32xbf16, #tpu.memory_space<vmem>>, vector<1x8x32xbf16>
    %16 = vector.shape_cast %15 : vector<1x8x32xbf16> to vector<8x32xbf16>
    %17 = arith.extf %16 : vector<8x32xbf16> to vector<8x32xf32>
    %18 = vector.broadcast %14 : vector<1x32xf32> to vector<8x32xf32>
    %19 = arith.addf %17, %18 : vector<8x32xf32>
    %20 = arith.truncf %19 : vector<8x32xf32> to vector<8x32xbf16>
    %c0_16 = arith.constant 0 : index
    %c0_17 = arith.constant 0 : index
    %21 = vector.load %arg10[%c0_16, %c0_17] : memref<32x32xbf16, #tpu.memory_space<vmem>>, vector<32x32xbf16>
    %cst_18 = arith.constant dense<0.000000e+00> : vector<8x32xf32>
    %22 = tpu.matmul %20, %21, %cst_18 {dimension_numbers = #tpu.dot_dimension_numbers<[1], [0], [0], [1], [0, 0, 1, 1], [], []>} : vector<8x32xbf16>, vector<32x32xbf16>, vector<8x32xf32> -> vector<8x32xf32>
    %c0_19 = arith.constant 0 : index
    %c0_20 = arith.constant 0 : index
    %23 = vector.load %arg11[%c0_19, %c0_20] : memref<1x32xf32, #tpu.memory_space<vmem>>, vector<1x32xf32>
    %24 = vector.broadcast %23 : vector<1x32xf32> to vector<8x32xf32>
    %25 = arith.addf %22, %24 : vector<8x32xf32>
    %c0_21 = arith.constant 0 : index
    %c0_22 = arith.constant 0 : index
    %26 = vector.load %arg12[%c0_21, %c0_22] : memref<32x32xbf16, #tpu.memory_space<vmem>>, vector<32x32xbf16>
    %cst_23 = arith.constant dense<0.000000e+00> : vector<32x32xf32>
    %27 = tpu.matmul %7, %26, %cst_23 {dimension_numbers = #tpu.dot_dimension_numbers<[1], [0], [0], [1], [0, 0, 1, 1], [], []>} : vector<32x32xbf16>, vector<32x32xbf16>, vector<32x32xf32> -> vector<32x32xf32>
    %c0_24 = arith.constant 0 : index
    %c0_25 = arith.constant 0 : index
    %28 = vector.load %arg13[%c0_24, %c0_25] : memref<1x32xf32, #tpu.memory_space<vmem>>, vector<1x32xf32>
    %29 = vector.broadcast %28 : vector<1x32xf32> to vector<32x32xf32>
    %30 = arith.addf %27, %29 : vector<32x32xf32>
    %c0_26 = arith.constant 0 : index
    %c0_27 = arith.constant 0 : index
    %31 = vector.load %arg14[%c0_26, %c0_27] : memref<32x32xbf16, #tpu.memory_space<vmem>>, vector<32x32xbf16>
    %cst_28 = arith.constant dense<0.000000e+00> : vector<32x32xf32>
    %32 = tpu.matmul %7, %31, %cst_28 {dimension_numbers = #tpu.dot_dimension_numbers<[1], [0], [0], [1], [0, 0, 1, 1], [], []>} : vector<32x32xbf16>, vector<32x32xbf16>, vector<32x32xf32> -> vector<32x32xf32>
    %c0_29 = arith.constant 0 : index
    %c0_30 = arith.constant 0 : index
    %33 = vector.load %arg15[%c0_29, %c0_30] : memref<1x32xf32, #tpu.memory_space<vmem>>, vector<1x32xf32>
    %34 = vector.broadcast %33 : vector<1x32xf32> to vector<32x32xf32>
    %35 = arith.addf %32, %34 : vector<32x32xf32>
    %36 = arith.truncf %25 : vector<8x32xf32> to vector<8x32xbf16>
    %37 = arith.truncf %30 : vector<32x32xf32> to vector<32x32xbf16>
    %cst_31 = arith.constant dense<0.000000e+00> : vector<8x32xf32>
    %38 = tpu.matmul %36, %37, %cst_31 {dimension_numbers = #tpu.dot_dimension_numbers<[1], [1], [0], [0], [0, 0, 1, 0], [], []>} : vector<8x32xbf16>, vector<32x32xbf16>, vector<8x32xf32> -> vector<8x32xf32>
    %cst_32 = arith.constant 0.176776692 : f32
    %39 = vector.broadcast %cst_32 : f32 to vector<8x32xf32>
    %40 = arith.mulf %38, %39 : vector<8x32xf32>
    %c0_33 = arith.constant 0 : index
    %c0_34 = arith.constant 0 : index
    %c0_35 = arith.constant 0 : index
    %41 = vector.load %arg3[%c0_33, %c0_34, %c0_35] : memref<1x1x32xf32, #tpu.memory_space<vmem>>, vector<1x1x32xf32>
    %42 = vector.shape_cast %41 : vector<1x1x32xf32> to vector<1x32xf32>
    %43 = vector.broadcast %42 : vector<1x32xf32> to vector<8x32xf32>
    %44 = arith.addf %40, %43 : vector<8x32xf32>
    %cst_36 = arith.constant dense<0xFF800000> : vector<8xf32>
    %45 = vector.multi_reduction <maximumf>, %44, %cst_36 [1] : vector<8x32xf32> to vector<8xf32>
    %46 = vector.shape_cast %45 : vector<8xf32> to vector<8x1xf32>
    %47 = vector.broadcast %46 : vector<8x1xf32> to vector<8x32xf32>
    %48 = arith.subf %44, %47 : vector<8x32xf32>
    %49 = math.exp %48 : vector<8x32xf32>
    %cst_37 = arith.constant dense<0.000000e+00> : vector<8xf32>
    %50 = vector.multi_reduction <add>, %49, %cst_37 [1] : vector<8x32xf32> to vector<8xf32>
    %51 = vector.shape_cast %50 : vector<8xf32> to vector<8x1xf32>
    %52 = tpu.reciprocal %51 : vector<8x1xf32> -> vector<8x1xf32>
    %53 = vector.broadcast %52 : vector<8x1xf32> to vector<8x32xf32>
    %54 = arith.mulf %49, %53 : vector<8x32xf32>
    %55 = arith.truncf %54 : vector<8x32xf32> to vector<8x32xbf16>
    %56 = arith.truncf %35 : vector<32x32xf32> to vector<32x32xbf16>
    %cst_38 = arith.constant dense<0.000000e+00> : vector<8x32xf32>
    %57 = tpu.matmul %55, %56, %cst_38 {dimension_numbers = #tpu.dot_dimension_numbers<[1], [0], [0], [1], [0, 0, 1, 1], [], []>} : vector<8x32xbf16>, vector<32x32xbf16>, vector<8x32xf32> -> vector<8x32xf32>
    %58 = arith.truncf %57 : vector<8x32xf32> to vector<8x32xbf16>
    %c0_39 = arith.constant 0 : index
    %c0_40 = arith.constant 0 : index
    %59 = vector.load %arg16[%c0_39, %c0_40] : memref<32x32xbf16, #tpu.memory_space<vmem>>, vector<32x32xbf16>
    %cst_41 = arith.constant dense<0.000000e+00> : vector<8x32xf32>
    %60 = tpu.matmul %58, %59, %cst_41 {dimension_numbers = #tpu.dot_dimension_numbers<[1], [0], [0], [1], [0, 0, 1, 1], [], []>} : vector<8x32xbf16>, vector<32x32xbf16>, vector<8x32xf32> -> vector<8x32xf32>
    %61 = arith.addf %19, %60 : vector<8x32xf32>
    %c0_42 = arith.constant 0 : index
    %c0_43 = arith.constant 0 : index
    %62 = vector.load %arg17[%c0_42, %c0_43] : memref<1x32xf32, #tpu.memory_space<vmem>>, vector<1x32xf32>
    %63 = vector.broadcast %62 : vector<1x32xf32> to vector<8x32xf32>
    %64 = arith.addf %61, %63 : vector<8x32xf32>
    %65 = arith.truncf %64 : vector<8x32xf32> to vector<8x32xbf16>
    %c0_44 = arith.constant 0 : index
    %c0_45 = arith.constant 0 : index
    %66 = vector.load %arg18[%c0_44, %c0_45] : memref<32x128xbf16, #tpu.memory_space<vmem>>, vector<32x128xbf16>
    %cst_46 = arith.constant dense<0.000000e+00> : vector<8x128xf32>
    %67 = tpu.matmul %65, %66, %cst_46 {dimension_numbers = #tpu.dot_dimension_numbers<[1], [0], [0], [1], [0, 0, 1, 1], [], []>} : vector<8x32xbf16>, vector<32x128xbf16>, vector<8x128xf32> -> vector<8x128xf32>
    %c0_47 = arith.constant 0 : index
    %c0_48 = arith.constant 0 : index
    %68 = vector.load %arg19[%c0_47, %c0_48] : memref<1x128xf32, #tpu.memory_space<vmem>>, vector<1x128xf32>
    %69 = vector.broadcast %68 : vector<1x128xf32> to vector<8x128xf32>
    %70 = arith.addf %67, %69 : vector<8x128xf32>
    %71 = arith.mulf %70, %70 : vector<8x128xf32>
    %72 = arith.mulf %70, %71 : vector<8x128xf32>
    %cst_49 = arith.constant 4.471500e-02 : f32
    %73 = vector.broadcast %cst_49 : f32 to vector<8x128xf32>
    %74 = arith.mulf %73, %72 : vector<8x128xf32>
    %75 = arith.addf %70, %74 : vector<8x128xf32>
    %cst_50 = arith.constant 0.797884583 : f32
    %76 = vector.broadcast %cst_50 : f32 to vector<8x128xf32>
    %77 = arith.mulf %76, %75 : vector<8x128xf32>
    %78 = math.tanh %77 : vector<8x128xf32>
    %cst_51 = arith.constant 1.000000e+00 : f32
    %79 = vector.broadcast %cst_51 : f32 to vector<8x128xf32>
    %80 = arith.addf %79, %78 : vector<8x128xf32>
    %cst_52 = arith.constant 5.000000e-01 : f32
    %81 = vector.broadcast %cst_52 : f32 to vector<8x128xf32>
    %82 = arith.mulf %81, %80 : vector<8x128xf32>
    %83 = arith.mulf %70, %82 : vector<8x128xf32>
    %84 = arith.truncf %83 : vector<8x128xf32> to vector<8x128xbf16>
    %c0_53 = arith.constant 0 : index
    %c0_54 = arith.constant 0 : index
    %85 = vector.load %arg20[%c0_53, %c0_54] : memref<128x32xbf16, #tpu.memory_space<vmem>>, vector<128x32xbf16>
    %cst_55 = arith.constant dense<0.000000e+00> : vector<8x32xf32>
    %86 = tpu.matmul %84, %85, %cst_55 {dimension_numbers = #tpu.dot_dimension_numbers<[1], [0], [0], [1], [0, 0, 1, 1], [], []>} : vector<8x128xbf16>, vector<128x32xbf16>, vector<8x32xf32> -> vector<8x32xf32>
    %c0_56 = arith.constant 0 : index
    %c0_57 = arith.constant 0 : index
    %87 = vector.load %arg21[%c0_56, %c0_57] : memref<1x32xf32, #tpu.memory_space<vmem>>, vector<1x32xf32>
    %88 = vector.broadcast %87 : vector<1x32xf32> to vector<8x32xf32>
    %89 = arith.addf %86, %88 : vector<8x32xf32>
    %90 = arith.addf %64, %89 : vector<8x32xf32>
    %91 = arith.truncf %90 : vector<8x32xf32> to vector<8x32xbf16>
    %c0_58 = arith.constant 0 : index
    %c0_59 = arith.constant 0 : index
    %92 = vector.load %arg22[%c0_58, %c0_59] : memref<32x64xbf16, #tpu.memory_space<vmem>>, vector<32x64xbf16>
    %cst_60 = arith.constant dense<0.000000e+00> : vector<8x64xf32>
    %93 = tpu.matmul %91, %92, %cst_60 {dimension_numbers = #tpu.dot_dimension_numbers<[1], [0], [0], [1], [0, 0, 1, 1], [], []>} : vector<8x32xbf16>, vector<32x64xbf16>, vector<8x64xf32> -> vector<8x64xf32>
    %c0_61 = arith.constant 0 : index
    %c0_62 = arith.constant 0 : index
    %94 = vector.load %arg23[%c0_61, %c0_62] : memref<1x64xf32, #tpu.memory_space<vmem>>, vector<1x64xf32>
    %95 = vector.broadcast %94 : vector<1x64xf32> to vector<8x64xf32>
    %96 = arith.addf %93, %95 : vector<8x64xf32>
    %c0_63 = arith.constant 0 : index
    %c0_64 = arith.constant 0 : index
    %c0_65 = arith.constant 0 : index
    %97 = vector.load %arg5[%c0_63, %c0_64, %c0_65] : memref<1x8x1xi32, #tpu.memory_space<vmem>>, vector<1x8x1xi32>
    %98 = vector.shape_cast %97 : vector<1x8x1xi32> to vector<8x1xi32>
    %c0_i32 = arith.constant 0 : i32
    %99 = vector.broadcast %c0_i32 : i32 to vector<8x1xi32>
    %100 = arith.cmpi sge, %98, %99 : vector<8x1xi32>
    %101 = arith.extui %100 : vector<8x1xi1> to vector<8x1xi32>
    %102 = arith.sitofp %101 : vector<8x1xi32> to vector<8x1xf32>
    %c0_i32_66 = arith.constant 0 : i32
    %103 = vector.broadcast %c0_i32_66 : i32 to vector<8x1xi32>
    %104 = arith.cmpi sge, %98, %103 : vector<8x1xi32>
    %c0_i32_67 = arith.constant 0 : i32
    %105 = vector.broadcast %c0_i32_67 : i32 to vector<8x1xi32>
    %106 = arith.select %104, %98, %105 : vector<8x1xi1>, vector<8x1xi32>
    %cst_68 = arith.constant dense<0xFF800000> : vector<8xf32>
    %107 = vector.multi_reduction <maximumf>, %96, %cst_68 [1] : vector<8x64xf32> to vector<8xf32>
    %108 = vector.shape_cast %107 : vector<8xf32> to vector<8x1xf32>
    %109 = vector.broadcast %108 : vector<8x1xf32> to vector<8x64xf32>
    %110 = arith.subf %96, %109 : vector<8x64xf32>
    %111 = math.exp %110 : vector<8x64xf32>
    %cst_69 = arith.constant dense<0.000000e+00> : vector<8xf32>
    %112 = vector.multi_reduction <add>, %111, %cst_69 [1] : vector<8x64xf32> to vector<8xf32>
    %113 = vector.shape_cast %112 : vector<8xf32> to vector<8x1xf32>
    %114 = math.log %113 : vector<8x1xf32>
    %115 = arith.addf %108, %114 : vector<8x1xf32>
    %116 = tpu.iota {dimensions = array<i32: 1>} : vector<8x64xi32>
    %117 = vector.broadcast %106 : vector<8x1xi32> to vector<8x64xi32>
    %118 = arith.cmpi eq, %116, %117 : vector<8x64xi32>
    %119 = arith.extui %118 : vector<8x64xi1> to vector<8x64xi32>
    %120 = arith.sitofp %119 : vector<8x64xi32> to vector<8x64xf32>
    %121 = arith.mulf %96, %120 : vector<8x64xf32>
    %cst_70 = arith.constant dense<0.000000e+00> : vector<8xf32>
    %122 = vector.multi_reduction <add>, %121, %cst_70 [1] : vector<8x64xf32> to vector<8xf32>
    %123 = vector.shape_cast %122 : vector<8xf32> to vector<8x1xf32>
    %124 = arith.subf %115, %123 : vector<8x1xf32>
    %125 = arith.mulf %124, %102 : vector<8x1xf32>
    %126 = vector.shape_cast %125 : vector<8x1xf32> to vector<1x8x1xf32>
    %cst_71 = arith.constant dense<0.000000e+00> : vector<1xf32>
    %127 = vector.multi_reduction <add>, %126, %cst_71 [1, 2] : vector<1x8x1xf32> to vector<1xf32>
    %128 = vector.shape_cast %127 : vector<1xf32> to vector<1x1x1xf32>
    %129 = vector.extract %128[0, 0, 0] : f32 from vector<1x1x1xf32>
    %130 = vector.broadcast %129 : f32 to vector<1x1xf32>
    %c0_72 = arith.constant 0 : index
    %c0_73 = arith.constant 0 : index
    %c0_74 = arith.constant 0 : index
    %131 = vector.load %arg24[%c0_72, %c0_73, %c0_74] : memref<1x1x1xf32, #tpu.memory_space<vmem>>, vector<1x1x1xf32>
    %132 = vector.shape_cast %131 : vector<1x1x1xf32> to vector<1x1xf32>
    %133 = vector.shape_cast %130 : vector<1x1xf32> to vector<1x1x1xf32>
    tpu.vector_store %arg24[%c0_72, %c0_73, %c0_74], %133 {strides = array<i32>} : memref<1x1x1xf32, #tpu.memory_space<vmem>>, vector<1x1x1xf32>,
    %134 = vector.shape_cast %102 : vector<8x1xf32> to vector<1x8x1xf32>
    %cst_75 = arith.constant dense<0.000000e+00> : vector<1xf32>
    %135 = vector.multi_reduction <add>, %134, %cst_75 [1, 2] : vector<1x8x1xf32> to vector<1xf32>
    %136 = vector.shape_cast %135 : vector<1xf32> to vector<1x1x1xf32>
    %137 = vector.extract %136[0, 0, 0] : f32 from vector<1x1x1xf32>
    %138 = vector.broadcast %137 : f32 to vector<1x1xf32>
    %c0_76 = arith.constant 0 : index
    %c0_77 = arith.constant 0 : index
    %c0_78 = arith.constant 0 : index
    %139 = vector.load %arg25[%c0_76, %c0_77, %c0_78] : memref<1x1x1xf32, #tpu.memory_space<vmem>>, vector<1x1x1xf32>
    %140 = vector.shape_cast %139 : vector<1x1x1xf32> to vector<1x1xf32>
    %141 = vector.shape_cast %138 : vector<1x1xf32> to vector<1x1x1xf32>
    tpu.vector_store %arg25[%c0_76, %c0_77, %c0_78], %141 {strides = array<i32>} : memref<1x1x1xf32, #tpu.memory_space<vmem>>, vector<1x1x1xf32>,
    return
  }
  func.func @transform_0(%arg0: i32) -> (i32, i32, i32) {
    %c0_i32 = arith.constant 0 : i32
    %c0_i32_0 = arith.constant 0 : i32
    %c0_i32_1 = arith.constant 0 : i32
    return %arg0, %c0_i32, %c0_i32_0 : i32, i32, i32
  }
  func.func @transform_1(%arg0: i32) -> (i32, i32, i32) {
    %c0_i32 = arith.constant 0 : i32
    %c0_i32_0 = arith.constant 0 : i32
    %c0_i32_1 = arith.constant 0 : i32
    return %arg0, %c0_i32, %c0_i32_0 : i32, i32, i32
  }
  func.func @transform_2(%arg0: i32) -> (i32, i32, i32) {
    %c0_i32 = arith.constant 0 : i32
    %c0_i32_0 = arith.constant 0 : i32
    %c0_i32_1 = arith.constant 0 : i32
    return %arg0, %c0_i32, %c0_i32_0 : i32, i32, i32
  }
  func.func @transform_3(%arg0: i32) -> (i32, i32, i32) {
    %c0_i32 = arith.constant 0 : i32
    %c0_i32_0 = arith.constant 0 : i32
    %c0_i32_1 = arith.constant 0 : i32
    return %arg0, %c0_i32, %c0_i32_0 : i32, i32, i32
  }
  func.func @transform_4(%arg0: i32) -> (i32, i32, i32) {
    %c0_i32 = arith.constant 0 : i32
    %c0_i32_0 = arith.constant 0 : i32
    %c0_i32_1 = arith.constant 0 : i32
    return %arg0, %c0_i32, %c0_i32_0 : i32, i32, i32
  }
  func.func @transform_5(%arg0: i32) -> (i32, i32) {
    %c0_i32 = arith.constant 0 : i32
    %c0_i32_0 = arith.constant 0 : i32
    %c0_i32_1 = arith.constant 0 : i32
    return %c0_i32, %c0_i32_0 : i32, i32
  }
  func.func @transform_6(%arg0: i32) -> (i32, i32) {
    %c0_i32 = arith.constant 0 : i32
    %c0_i32_0 = arith.constant 0 : i32
    %c0_i32_1 = arith.constant 0 : i32
    return %c0_i32, %c0_i32_0 : i32, i32
  }
  func.func @transform_7(%arg0: i32) -> (i32, i32) {
    %c0_i32 = arith.constant 0 : i32
    %c0_i32_0 = arith.constant 0 : i32
    %c0_i32_1 = arith.constant 0 : i32
    return %c0_i32, %c0_i32_0 : i32, i32
  }
  func.func @transform_8(%arg0: i32) -> (i32, i32) {
    %c0_i32 = arith.constant 0 : i32
    %c0_i32_0 = arith.constant 0 : i32
    %c0_i32_1 = arith.constant 0 : i32
    return %c0_i32, %c0_i32_0 : i32, i32
  }
  func.func @transform_9(%arg0: i32) -> (i32, i32) {
    %c0_i32 = arith.constant 0 : i32
    %c0_i32_0 = arith.constant 0 : i32
    %c0_i32_1 = arith.constant 0 : i32
    return %c0_i32, %c0_i32_0 : i32, i32
  }
  func.func @transform_10(%arg0: i32) -> (i32, i32) {
    %c0_i32 = arith.constant 0 : i32
    %c0_i32_0 = arith.constant 0 : i32
    %c0_i32_1 = arith.constant 0 : i32
    return %c0_i32, %c0_i32_0 : i32, i32
  }
  func.func @transform_11(%arg0: i32) -> (i32, i32) {
    %c0_i32 = arith.constant 0 : i32
    %c0_i32_0 = arith.constant 0 : i32
    %c0_i32_1 = arith.constant 0 : i32
    return %c0_i32, %c0_i32_0 : i32, i32
  }
  func.func @transform_12(%arg0: i32) -> (i32, i32) {
    %c0_i32 = arith.constant 0 : i32
    %c0_i32_0 = arith.constant 0 : i32
    %c0_i32_1 = arith.constant 0 : i32
    return %c0_i32, %c0_i32_0 : i32, i32
  }
  func.func @transform_13(%arg0: i32) -> (i32, i32) {
    %c0_i32 = arith.constant 0 : i32
    %c0_i32_0 = arith.constant 0 : i32
    %c0_i32_1 = arith.constant 0 : i32
    return %c0_i32, %c0_i32_0 : i32, i32
  }
  func.func @transform_14(%arg0: i32) -> (i32, i32) {
    %c0_i32 = arith.constant 0 : i32
    %c0_i32_0 = arith.constant 0 : i32
    %c0_i32_1 = arith.constant 0 : i32
    return %c0_i32, %c0_i32_0 : i32, i32
  }
  func.func @transform_15(%arg0: i32) -> (i32, i32) {
    %c0_i32 = arith.constant 0 : i32
    %c0_i32_0 = arith.constant 0 : i32
    %c0_i32_1 = arith.constant 0 : i32
    return %c0_i32, %c0_i32_0 : i32, i32
  }
  func.func @transform_16(%arg0: i32) -> (i32, i32) {
    %c0_i32 = arith.constant 0 : i32
    %c0_i32_0 = arith.constant 0 : i32
    %c0_i32_1 = arith.constant 0 : i32
    return %c0_i32, %c0_i32_0 : i32, i32
  }
  func.func @transform_17(%arg0: i32) -> (i32, i32) {
    %c0_i32 = arith.constant 0 : i32
    %c0_i32_0 = arith.constant 0 : i32
    %c0_i32_1 = arith.constant 0 : i32
    return %c0_i32, %c0_i32_0 : i32, i32
  }
  func.func @transform_18(%arg0: i32) -> (i32, i32) {
    %c0_i32 = arith.constant 0 : i32
    %c0_i32_0 = arith.constant 0 : i32
    %c0_i32_1 = arith.constant 0 : i32
    return %c0_i32, %c0_i32_0 : i32, i32
  }
  func.func @transform_19(%arg0: i32) -> (i32, i32) {
    %c0_i32 = arith.constant 0 : i32
    %c0_i32_0 = arith.constant 0 : i32
    %c0_i32_1 = arith.constant 0 : i32
    return %c0_i32, %c0_i32_0 : i32, i32
  }
  func.func @transform_20(%arg0: i32) -> (i32, i32) {
    %c0_i32 = arith.constant 0 : i32
    %c0_i32_0 = arith.constant 0 : i32
    %c0_i32_1 = arith.constant 0 : i32
    return %c0_i32, %c0_i32_0 : i32, i32
  }
  func.func @transform_21(%arg0: i32) -> (i32, i32) {
    %c0_i32 = arith.constant 0 : i32
    %c0_i32_0 = arith.constant 0 : i32
    %c0_i32_1 = arith.constant 0 : i32
    return %c0_i32, %c0_i32_0 : i32, i32
  }
  func.func @transform_22(%arg0: i32) -> (i32, i32) {
    %c0_i32 = arith.constant 0 : i32
    %c0_i32_0 = arith.constant 0 : i32
    %c0_i32_1 = arith.constant 0 : i32
    return %c0_i32, %c0_i32_0 : i32, i32
  }
  func.func @transform_23(%arg0: i32) -> (i32, i32, i32) {
    %c0_i32 = arith.constant 0 : i32
    %c0_i32_0 = arith.constant 0 : i32
    %c0_i32_1 = arith.constant 0 : i32
    return %arg0, %c0_i32, %c0_i32_0 : i32, i32, i32
  }
  func.func @transform_24(%arg0: i32) -> (i32, i32, i32) {
    %c0_i32 = arith.constant 0 : i32
    %c0_i32_0 = arith.constant 0 : i32
    %c0_i32_1 = arith.constant 0 : i32
    return %arg0, %c0_i32, %c0_i32_0 : i32, i32, i32
  }
}

</mosaic_0001>

<bundles_post_ra>
// kernel: img_supervised_forward.1
= control target key start
LH: loop header
LB: loop body
LE: loop exit
PB: predicated region body
PF: predicated region fallthrough
CT: control target
= control target key end

     0   :  { %s2349_s0 = inlined_call_operand.vmem [shape: bf16[2,32,48], index: 0, kind: input, shape index: {}]   ;;  %s2350_s1 = inlined_call_operand.vmem [shape: bf16[2,8,32], index: 1, kind: input, shape index: {}]   ;;  %s2351_s2 = inlined_call_operand.vmem [shape: f32[2,1,32], index: 2, kind: input, shape index: {}]   ;;  %s2352_s3 = inlined_call_operand.vmem [shape: f32[2,1,1], index: 3, kind: input, shape index: {}]   ;;  %s2353_s4 = inlined_call_operand.vmem [shape: s32[2,8,1], index: 4, kind: input, shape index: {}]   ;;  %s2354_s5 = inlined_call_operand.vmem [shape: bf16[48,32], index: 5, kind: input, shape index: {}]   ;;  %s2355_s6 = inlined_call_operand.vmem [shape: f32[1,32], index: 6, kind: input, shape index: {}]   ;;  %s2356_s7 = inlined_call_operand.vmem [shape: f32[1,32], index: 7, kind: input, shape index: {}]   ;;  %s2357_s8 = inlined_call_operand.vmem [shape: f32[1,32], index: 8, kind: input, shape index: {}]   ;;  %s2358_s9 = inlined_call_operand.vmem [shape: bf16[32,32], index: 9, kind: input, shape index: {}]   ;;  %s2359_s10 = inlined_call_operand.vmem [shape: f32[1,32], index: 10, kind: input, shape index: {}]   ;;  %s2360_s11 = inlined_call_operand.vmem [shape: bf16[32,32], index: 11, kind: input, shape index: {}]   ;;  %s2361_s12 = inlined_call_operand.vmem [shape: f32[1,32], index: 12, kind: input, shape index: {}]   ;;  %s2362_s13 = inlined_call_operand.vmem [shape: bf16[32,32], index: 13, kind: input, shape index: {}]   ;;  %s2363_s14 = inlined_call_operand.vmem [shape: f32[1,32], index: 14, kind: input, shape index: {}]   ;;  %s2364_s15 = inlined_call_operand.vmem [shape: bf16[32,32], index: 15, kind: input, shape index: {}]   ;;  %s2365_s16 = inlined_call_operand.vmem [shape: f32[1,32], index: 16, kind: input, shape index: {}]   ;;  %s2366_s17 = inlined_call_operand.vmem [shape: bf16[32,128], index: 17, kind: input, shape index: {}]   ;;  %s2367_s18 = inlined_call_operand.vmem [shape: f32[1,128], index: 18, kind: input, shape index: {}]   ;;  %s2368_s19 = inlined_call_operand.vmem [shape: bf16[128,32], index: 19, kind: input, shape index: {}]   ;;  %s2369_s20 = inlined_call_operand.vmem [shape: f32[1,32], index: 20, kind: input, shape index: {}]   ;;  %s2370_s21 = inlined_call_operand.vmem [shape: bf16[32,64], index: 21, kind: input, shape index: {}]   ;;  %s2371_s22 = inlined_call_operand.vmem [shape: f32[1,64], index: 22, kind: input, shape index: {}]   ;;  %s2372_s23 = inlined_call_operand.vmem [shape: f32[2,1,1], index: 23, kind: output, shape index: {0}]   ;;  %s2373_s24 = inlined_call_operand.vmem [shape: f32[2,1,1], index: 24, kind: output, shape index: {1}]  }
   0x1   :  { %2375 = sst [smem:[#allocation2_spill]] %s2349_s0 }
   0x2   :  { %2376 = sst [smem:[#allocation3_spill]] %s2350_s1 }
   0x3   :  { %2377 = sst [smem:[#allocation4_spill]] %s2351_s2 }
   0x4   :  { %2378 = sst [smem:[#allocation5_spill]] %s2352_s3 }
   0x5   :  { %2379 = sst [smem:[#allocation6_spill]] %s2353_s4 }
   0x6   :  { %2380 = sst [smem:[#allocation7_spill]] %s2354_s5  ;;  %s2147_s5 = smov 0  }
   0x7   :  { %2381 = sst [smem:[#allocation8_spill]] %s2355_s6 }
   0x8   :  { %2382 = sst [smem:[#allocation9_spill]] %s2356_s7 }
   0x9   :  { %2383 = sst [smem:[#allocation10_spill]] %s2357_s8 }
   0xa LB: > { %s1765_s26 = sadd.s32 4294967295, %s2017_s5   ;;  %p1769_p0 = scmp.ge.s32.totalorder %s2017_s5, 1  ;;  %s2017_s5 = sphi %s2147_s5, %s35_s5  }
   0xb   : > { %p699_p1 = scmp.lt.s32.totalorder %s2017_s5, 3 }
   0xd   : > { %p700_p2 = pnand %p1769_p0, %p699_p1 }
   0xe   : > { %s2384_s6 = sld [smem:[#allocation7_spill]] (!%p700_p2)  ;;  %p780_p3 = scmp.lt.s32.totalorder (!%p700_p2), %s1765_s26, 1  ;;  %v2019_v3 = vmov (!%p700_p2), 0   ;;  %vm851_vm0 = vcmask (!%p700_p2), 392192   ;;  %v1981_v7 = vld [vmem:[%s2358_s9] sm:$0xff] (!%p700_p2)   ;;  %v1982_v8 = vld [vmem:[%s2358_s9 + $0x8] sm:$0xff] (!%p700_p2)   ;;  %v916_v13 = vlaneseq (!%p700_p2) }
   0xf   : > { %703 = sbr.rel (%p700_p2) target bundleno = 2658 (0xa62), region = 112  ;;  %1974 = vset.pattern.permute.xlu0 (!%p700_p2), %v2019_v3  ;;  %s2385_s8 = sld [smem:[#allocation5_spill]] (!%p700_p2)  ;;  %1975 = vset.pattern.permute.xlu1 (!%p700_p2), %v2019_v3  ;;  %v2020_v9 = vmov (!%p700_p2), 0.0   ;;  %vm2021_vm1 = vmmov (!%p700_p2), 0   ;;  %v1983_v10 = vld [vmem:[%s2360_s11] sm:$0xff] (!%p700_p2)   ;;  %v1986_v12 = vld [vmem:[%s2362_s13 + $0x8] sm:$0xff] (!%p700_p2)  }
  0x10   : > { %s2386_s28 = sld [smem:[#allocation2_spill]] (!%p700_p2)  ;;  %v1984_v11 = vld [vmem:[%s2362_s13] sm:$0xff] (!%p700_p2)   ;;  %v917_v14 = vshrl.u32 (!%p700_p2), %v916_v13, 7  ;;  %s2387_s0 = sld [smem:[#allocation3_spill]] (!%p700_p2)  ;;  %vm956_vm2 = vcmask (!%p700_p2), 261120   ;;  %v1985_v27 = vld [vmem:[%s2360_s11 + $0x8] sm:$0xff] (!%p700_p2)  }
  0x11   : > { %1891 = vmatprep.subr.bf16.mxu0 (!%p700_p2), %v1984_v11  ;;  %s2388_s25 = sld [smem:[#allocation9_spill]] (!%p700_p2)  ;;  %s2389_s1 = sld [smem:[#allocation10_spill]] (!%p700_p2)  ;;  %v1786_v44 = vld [vmem:[%s2361_s12] ss:$0 sm:$0xff] (!%p700_p2)  ;;  %vm1598_vm3 = vcmask (!%p700_p2), 523264   ;;  %vm1625_vm6 = vcmask (!%p700_p2), 7168  }
  0x12   : > { %1892 = vmatpush3.bf16.msra.mxu0 (!%p700_p2), %v1984_v11  ;;  %v918_v15 = vsub.s32 (!%p700_p2), 0, %v917_v14  ;;  %v1791_v46 = vld [vmem:[%s2363_s14] ss:$0 sm:$0xff] (!%p700_p2)  ;;  %s2392_s3 = sld [smem:[#allocation6_spill]] (!%p700_p2)  ;;  %vm1637_vm7 = vcmask (!%p700_p2), 0  }
  0x13   : > { %1893 = vmatprep.subr.bf16.mxu0 (!%p700_p2), %v1986_v12 }
  0x14   : > { %v1976_v0 = vld [vmem:[%s2384_s6] sm:$0xff] (!%p700_p2)   ;;  %v1977_v1 = vld [vmem:[%s2384_s6 + $0x8] sm:$0xff] (!%p700_p2)   ;;  %v1978_v2 = vld [vmem:[%s2384_s6 + $0x10] sm:$0xff] (!%p700_p2)  }
  0x15   : > { %1865 = vmatprep.subr.bf16.mxu1 (!%p700_p2), %v1976_v0 }
  0x16   : > { %s2394_s26 = smov (!%p780_p3, %s1765_s26), 1  ;;  %1866 = vmatpush3.bf16.msra.mxu1 %v1976_v0  ;;  %1894 = vmatpush3.bf16.msra.mxu0 %v1986_v12 }
  0x17   : > { %1867 = vmatprep.subr.bf16.mxu1 %v1977_v1  ;;  %s1824_s30 = sshll.u32 %s2394_s26, 4  ;;  %s794_s4 = scalar_lea.vmem %s2385_s8, %s2394_s26  ;;  %1907 = vmatprep.subr.bf16.mxu0 %v2020_v9  ;;  %v910_v16 = vld [vmem:[%s2388_s25] sm:$0x1] }
  0x18   : > { %s784_s2 = scalar_lea.vmem %s2386_s28, %s1824_s30  ;;  %v909_v4 = vld [vmem:[%s794_s4] sm:$0x1]  ;;  %s1772_s28 = sshll.u32 %s2394_s26, 2 }
  0x19   : > { %v1979_v5 = vld [vmem:[%s784_s2] sm:$0xff]   ;;  %913 = vperm.xlu0 %1974, %v909_v4   ;;  %v1980_v6 = vld [vmem:[%s784_s2 + $0x8] sm:$0xff]   ;;  %s788_s7 = scalar_lea.vmem %s2387_s0, %s1772_s28  ;;  %s2390_s0 = sld [smem:[#allocation8_spill]] }
  0x1a   : > { %1868 = vmatpush3.bf16.msra.mxu1 %v1977_v1  ;;  %1871 = vmatprep.mubr.msk.bf16.mxu1 %vm851_vm0, %v1979_v5  ;;  %v921_v19 = vld [vmem:[%s2389_s1] sm:$0x1]  ;;  %s2391_s28 = sld [smem:[#allocation4_spill]]  ;;  %s1773_s29 = sshll.u32 %s2394_s26, 3 }
  0x1b   : > { %1869 = vmatprep.subr.bf16.mxu1 %v1978_v2  ;;  %v923_v20 = vld [vmem:[%s788_s7] sm:$0xf]  ;;  %s798_s30 = scalar_lea.vmem %s2392_s3, %s1773_s29  ;;  %s801_s4 = scalar_lea.vmem %s2372_s23, %s2394_s26 }
  0x1c   : > { %v924_v23 = vunpack.c.l.bf16 %v923_v20 }
  0x1e   : > { %1870 = vmatpush3.bf16.msra.mxu1 %v1978_v2  ;;  %v1782_v2 = vld [vmem:[%s2359_s10] ss:$0 sm:$0xff] }
  0x1f   : > { %1875 = vmatprep.subr.bf16.mxu1 %v2020_v9  ;;  %v1774_v29 = vld [vmem:[%s2390_s0] ss:$0 sm:$0xff] }
  0x20   : > { %s791_s2 = scalar_lea.vmem %s2391_s28, %s2394_s26 }
  0x21   : > { %1872 = vmatmul.mubr.msk.bf16.vlgmr.msra.gmra.mrb[0].mxu1 %vm851_vm0, %v1980_v6 }
  0x22   : > { %1879 = vmatprep.mubr.msk.bf16.mxu1 %vm2021_vm1, %v2020_v9  ;;  %1876 = vmatpush3.bf16.msra.mxu1 %v1981_v7  ;;  %v1797_v7 = vld [vmem:[%s791_s2] ss:$0 sm:$0xff]  ;;  %s804_s2 = scalar_lea.vmem %s2373_s24, %s2394_s26 }
  0x23   : > { %1877 = vmatprep.subr.bf16.mxu1 %v2020_v9 }
  0x26   : > { %1878 = vmatpush3.bf16.msra.mxu1 %v1982_v8 }
  0x27   : > { %1883 = vmatprep.subr.bf16.mxu1 %v1983_v10 }
  0x98   : > { %v914_v17 = vpop.permute.xlu0 %913 }
  0x99   : > { %v919_v18 = vrot.slane %v914_v17, %v918_v15 }
  0x9b   : > { %v920_v21 = vmul.f32 %v919_v18, %v910_v16 }
  0x9d   : > { %v922_v22 = vadd.f32 %v921_v19, %v920_v21 }
  0x9f   : > { %v929_v24 = vrot.slane %v922_v22, %v918_v15 }
  0xa1   : > { %v2205_v25 = vadd.f32 %v929_v24, %v924_v23  ;;  %v1987_v24 = vld [vmem:[%s2364_s15] sm:$0xff]  }
  0xa3   : > { %v932_v26 = vpack.c.bf16 %v2205_v25, %v2205_v25 }
  0xa5   : > { %1880 = vmatmul.mubr.msk.bf16.vlgmr.msra.gmra.mrb[4].mxu1 %vm956_vm2, %v932_v26 }
  0xa6   : > { %1884 = vmatpush3.bf16.msra.mxu1 %v1983_v10 }
  0xa7   : > { %1885 = vmatprep.subr.bf16.mxu1 %v1985_v27 }
  0xaa   : > { %1886 = vmatpush3.bf16.msra.mxu1 %v1985_v27  ;;  %v1988_v27 = vld [vmem:[%s2364_s15 + $0x8] sm:$0xff]  }
  0xab   : > { %1899 = vmatprep.subr.bf16.mxu1 %v2020_v9 }
  0xf4   : > { %v1873_v28 = vpop.f32.mrb[0].mxu1 }
  0xf5   : > { %v892_v30 = vpop.f32.mrb[1].mxu1  ;;  %v901_v32 = vadd.f32 %v1873_v28, %v1774_v29  ;;  %v1989_v28 = vld [vmem:[%s2366_s17] sm:$0xff]  }
  0xf6   : > { %v1874_v31 = vpop.f32.mrb[2].mxu1  ;;  %v893_v35 = vadd.f32 %v1774_v29, %v892_v30 }
  0xf7   : > { %v904_v33 = vadd.f32 %v1874_v31, %v1774_v29  ;;  %v895_v34 = vpop.f32.mrb[3].mxu1 }
  0xf8   : > { %v896_v36 = vadd.f32 %v1774_v29, %v895_v34  ;;  %v1990_v34 = vld [vmem:[%s2366_s17 + $0x8] sm:$0xff]  }
  0xf9   : > { %v908_v37 = vpack.c.bf16 %v904_v33, %v901_v32 }
  0xfa   : > { %v907_v38 = vpack.c.bf16 %v896_v36, %v893_v35  ;;  %v1802_v36 = vld [vmem:[%s2365_s16] ss:$0 sm:$0xff] }
  0xfc   : > { %1887 = vmatprep.mubr.msk.bf16.mxu1 %vm956_vm2, %v907_v38  ;;  %1895 = vmatprep.mubr.msk.bf16.mxu0 %vm956_vm2, %v907_v38 }
  0xfd   : > { %1888 = vmatmul.mubr.msk.bf16.vlgmr.msra.gmra.mrb[8].mxu1 %vm956_vm2, %v908_v37  ;;  %1896 = vmatmul.mubr.msk.bf16.vlgmr.msra.gmra.mrb[0].mxu0 %vm956_vm2, %v908_v37 }
  0xfe   : > { %1903 = vmatprep.mubr.msk.bf16.mxu1 %vm2021_vm1, %v2020_v9  ;;  %1911 = vmatprep.mubr.msk.bf16.mxu0 %vm2021_vm1, %v2020_v9 }
 0x178   : > { %v994_v39 = vpop.f32.mrb[4].mxu1 }
 0x179   : > { %v1881_v40 = vpop.f32.mrb[5].mxu1  ;;  %v995_v4 = vadd.f32 %v1782_v2, %v994_v39 }
 0x17a   : > { %v997_v41 = vpop.f32.mrb[6].mxu1 }
 0x17b   : > { %v1882_v42 = vpop.f32.mrb[7].mxu1  ;;  %v1150_v5 = vpack.c.bf16 %v995_v4, %v995_v4  ;;  %v1807_v4 = vld [vmem:[%s2369_s20] ss:$0 sm:$0xff] }
 0x1d0   : > { %v1889_v43 = vpop.f32.mrb[8].mxu1  ;;  %v1897_v45 = vpop.f32.mrb[0].mxu0 }
 0x1d1   : > { %v1063_v47 = vpop.f32.mrb[9].mxu1  ;;  %v1135_v48 = vpop.f32.mrb[1].mxu0  ;;  %v1072_v51 = vadd.f32 %v1889_v43, %v1786_v44  ;;  %v1144_v52 = vadd.f32 %v1897_v45, %v1791_v46  ;;  %v1991_v43 = vld [vmem:[%s2368_s19] sm:$0xff]   ;;  %v1994_v45 = vld [vmem:[%s2368_s19 + $0x18] sm:$0xff]  }
 0x1d2   : > { %v1890_v49 = vpop.f32.mrb[10].mxu1  ;;  %v1898_v50 = vpop.f32.mrb[2].mxu0  ;;  %v1064_v57 = vadd.f32 %v1786_v44, %v1063_v47  ;;  %v1136_v58 = vadd.f32 %v1791_v46, %v1135_v48  ;;  %v1996_v47 = vld [vmem:[%s2368_s19 + $0x28] sm:$0xff]   ;;  %v1997_v48 = vld [vmem:[%s2368_s19 + $0x30] sm:$0xff]  }
 0x1d3   : > { %v1075_v53 = vadd.f32 %v1890_v49, %v1786_v44  ;;  %v1147_v54 = vadd.f32 %v1898_v50, %v1791_v46  ;;  %v1066_v55 = vpop.f32.mrb[11].mxu1  ;;  %v1138_v56 = vpop.f32.mrb[3].mxu0  ;;  %v1998_v49 = vld [vmem:[%s2368_s19 + $0x38] sm:$0xff]   ;;  %v1999_v50 = vld [vmem:[%s2370_s21] sm:$0xff]  }
 0x1d4   : > { %v1067_v59 = vadd.f32 %v1786_v44, %v1066_v55  ;;  %v1139_v60 = vadd.f32 %v1791_v46, %v1138_v56  ;;  %v1993_v44 = vld [vmem:[%s2368_s19 + $0x10] sm:$0xff]   ;;  %v1995_v46 = vld [vmem:[%s2368_s19 + $0x20] sm:$0xff]  }
 0x1d5   : > { %v1152_v61 = vpack.c.bf16 %v1075_v53, %v1072_v51  ;;  %v1224_v62 = vpack.c.bf16 %v1147_v54, %v1144_v52  ;;  %v1803_v51 = vld [vmem:[%s2367_s18] ss:$0 sm:$0xff] }
 0x1d6   : > { %v1151_v63 = vpack.c.bf16 %v1067_v59, %v1064_v57  ;;  %v1223_v0 = vpack.c.bf16 %v1139_v60, %v1136_v58 }
 0x1d7   : > { %v1160_v3 = vsel %vm956_vm2, %v1152_v61, 0 }
 0x1d8   : > { %1908 = vmatpush3.bf16.msra.mxu0 %v1223_v0  ;;  %v1157_v1 = vsel %vm956_vm2, %v1151_v63, 0 }
 0x1d9   : > { %1900 = vmatpush3.bf16.xpose.msra.mxu1 %v1157_v1  ;;  %1909 = vmatprep.subr.bf16.mxu0 %v2020_v9 }
 0x1da   : > { %1901 = vmatprep.subr.bf16.mxu1 %v2020_v9 }
 0x1dc   : > { %1910 = vmatpush3.bf16.msra.mxu0 %v1224_v62 }
 0x1dd   : > { %1915 = vmatprep.subr.bf16.mxu0 %v2020_v9 }
 0x1e1   : > { %1902 = vmatpush3.bf16.xpose.msra.mxu1 %v1160_v3  ;;  %v2000_v3 = vld [vmem:[%s2370_s21 + $0x8] sm:$0xff]  }
 0x1e2   : > { %1923 = vmatprep.subr.bf16.mxu1 %v2020_v9 }
 0x1e8   : > { %1904 = vmatmul.mubr.msk.bf16.vlgmr.msra.gmra.mrb[12].mxu1 %vm956_vm2, %v1150_v5 }
 0x1e9   : > { %1927 = vmatprep.mubr.msk.bf16.mxu1 %vm2021_vm1, %v2020_v9  ;;  %1924 = vmatpush3.bf16.msra.mxu1 %v1989_v28 }
 0x1ea   : > { %1925 = vmatprep.subr.bf16.mxu1 %v2020_v9 }
 0x1ed   : > { %1926 = vmatpush3.bf16.msra.mxu1 %v1990_v34 }
 0x1ee   : > { %1951 = vmatprep.subr.bf16.mxu1 %v2020_v9 }
 0x2bb   : > { %v1196_v6 = vpop.f32.mrb[12].mxu1 }
 0x2bc   : > { %v1202_v8 = vmul.f32 0.17677669, %v1196_v6  ;;  %v1905_v10 = vpop.f32.mrb[13].mxu1 }
 0x2bd   : > { %v1199_v11 = vpop.f32.mrb[14].mxu1 }
 0x2be   : > { %v1906_v12 = vpop.f32.mrb[15].mxu1  ;;  %v1210_v14 = vadd.f32 %v1797_v7, %v1202_v8 }
 0x2c0   : > { %v1211_v15 = vsel %vm956_vm2, %v1210_v14, -inf }
 0x2c1   : > { %1212 = vmax.xlane.f32.xlu0 %v1211_v15 }
 0x34e   : > { %v1213_v16 = vpop.xlane.xlu0 %1212 }
 0x34f   : > { %v1214_v17 = vsub.f32 %v1210_v14, %v1213_v16  ;;  %v1816_v14 = vld [vmem:[%s2371_s22] ss:$0 sm:$0xff] }
 0x351   : > { %v1215_v18 = vmul.f32 1.442695, %v1214_v17 }
 0x353   : > { %2001 = vpow2.f32 %v1215_v18 }
 0x35d   : > { %v2002_v19 = vpop.eup %2001 }
 0x35e   : > { %v1217_v20 = vsel %vm956_vm2, %v2002_v19, 0.0 }
 0x35f   : > { %1218 = vadd.xlane.f32.xlu1 %v1217_v20 }
 0x3ec   : > { %v1219_v21 = vpop.xlane.xlu1 %1218 }
 0x3ed   : > { %2003 = vrcp.f32 %v1219_v21  ;;  %v1593_v21 = vld [vmem:[%s798_s30] sm:$0xff] }
 0x3ee   : > { %vm1594_vm4 = vcmp.ge.s32.totalorder %v1593_v21, 0 }
 0x3f7   : > { %v2004_v22 = vpop.eup %2003 }
 0x3f8   : > { %v1221_v23 = vmul.f32 %v2004_v22, %v2002_v19  ;;  %v1597_v22 = vsel %vm1594_vm4, %v1593_v21, 0 }
 0x3fa   : > { %v1222_v26 = vpack.c.bf16 %v1221_v23, %v1221_v23 }
 0x3fc   : > { %1912 = vmatmul.mubr.msk.bf16.vlgmr.msra.gmra.mrb[4].mxu0 %vm956_vm2, %v1222_v26  ;;  %v1612_v26 = vand.u32 127, %v916_v13 }
 0x3fd   : > { %1916 = vmatpush3.bf16.msra.mxu0 %v1987_v24  ;;  %1919 = vmatprep.mubr.msk.bf16.mxu0 %vm2021_vm1, %v2020_v9 }
 0x3fe   : > { %1917 = vmatprep.subr.bf16.mxu0 %v2020_v9 }
 0x401   : > { %1918 = vmatpush3.bf16.msra.mxu0 %v1988_v27 }
 0x402   : > { %1931 = vmatprep.subr.bf16.mxu0 %v2020_v9 }
 0x4cf   : > { %v1262_v29 = vpop.f32.mrb[4].mxu0 }
 0x4d0   : > { %v1268_v30 = vpack.c.bf16 %v1262_v29, %v1262_v29  ;;  %v1913_v31 = vpop.f32.mrb[5].mxu0 }
 0x4d1   : > { %v1265_v32 = vpop.f32.mrb[6].mxu0 }
 0x4d2   : > { %v1914_v33 = vpop.f32.mrb[7].mxu0  ;;  %1920 = vmatmul.mubr.msk.bf16.vlgmr.msra.gmra.mrb[8].mxu0 %vm956_vm2, %v1268_v30 }
 0x4d3   : > { %1947 = vmatprep.mubr.msk.bf16.mxu0 %vm2021_vm1, %v2020_v9  ;;  %1932 = vmatpush3.bf16.msra.mxu0 %v1991_v43 }
 0x4d4   : > { %1933 = vmatprep.subr.bf16.mxu0 %v2020_v9 }
 0x5a5   : > { %v1322_v35 = vpop.f32.mrb[8].mxu0 }
 0x5a6   : > { %v1328_v37 = vadd.f32 %v1322_v35, %v2205_v25  ;;  %v1921_v38 = vpop.f32.mrb[9].mxu0  ;;  %v1992_v25 = vld [vmem:[%s2368_s19 + $0x8] sm:$0xff]  }
 0x5a7   : > { %v1325_v39 = vpop.f32.mrb[10].mxu0  ;;  %1934 = vmatpush3.bf16.msra.mxu0 %v1992_v25  ;;  %v1820_v38 = vsel %vm1594_vm4, 1.0, %v2020_v9 }
 0x5a8   : > { %v1336_v40 = vadd.f32 %v1802_v36, %v1328_v37  ;;  %v1922_v41 = vpop.f32.mrb[11].mxu0  ;;  %1935 = vmatprep.subr.bf16.mxu0 %v2020_v9 }
 0x5aa   : > { %v1337_v42 = vpack.c.bf16 %v1336_v40, %v1336_v40 }
 0x5ab   : > { %1936 = vmatpush3.bf16.msra.mxu0 %v1993_v44 }
 0x5ac   : > { %1928 = vmatmul.mubr.msk.bf16.vlgmr.msra.gmra.mrb[16].mxu1 %vm956_vm2, %v1337_v42  ;;  %1937 = vmatprep.subr.bf16.mxu0 %v2020_v9  ;;  %v1639_v42 = vsel %vm1625_vm6, %v1820_v38, 0.0 }
 0x5ad   : > { %1955 = vmatprep.mubr.msk.bf16.mxu1 %vm2021_vm1, %v2020_v9  ;;  %1952 = vmatpush3.bf16.msra.mxu1 %v1999_v50 }
 0x5ae   : > { %1953 = vmatprep.subr.bf16.mxu1 %v2020_v9 }
 0x5af   : > { %1938 = vmatpush3.bf16.msra.mxu0 %v1994_v45 }
 0x5b0   : > { %1939 = vmatprep.subr.bf16.mxu0 %v2020_v9 }
 0x5b1   : > { %1954 = vmatpush3.bf16.msra.mxu1 %v2000_v3 }
 0x5b3   : > { %1940 = vmatpush3.bf16.msra.mxu0 %v1995_v46 }
 0x5b4   : > { %1941 = vmatprep.subr.bf16.mxu0 %v2020_v9 }
 0x5b7   : > { %1942 = vmatpush3.bf16.msra.mxu0 %v1996_v47 }
 0x5b8   : > { %1943 = vmatprep.subr.bf16.mxu0 %v2020_v9 }
 0x5bb   : > { %1944 = vmatpush3.bf16.msra.mxu0 %v1997_v48 }
 0x5bc   : > { %1945 = vmatprep.subr.bf16.mxu0 %v2020_v9 }
 0x5bf   : > { %1946 = vmatpush3.bf16.msra.mxu0 %v1998_v49 }
 0x67f   : > { %v1398_v52 = vpop.f32.mrb[16].mxu1 }
 0x680   : > { %v1399_v53 = vadd.f32 %v1803_v51, %v1398_v52  ;;  %v1929_v54 = vpop.f32.mrb[17].mxu1 }
 0x681   : > { %v1401_v55 = vpop.f32.mrb[18].mxu1 }
 0x682   : > { %v1404_v56 = vmul.f32 %v1399_v53, %v1399_v53  ;;  %v1930_v57 = vpop.f32.mrb[19].mxu1 }
 0x684   : > { %v1405_v58 = vmul.f32 %v1404_v56, %v1399_v53 }
 0x686   : > { %v1406_v59 = vmul.f32 0.044715, %v1405_v58 }
 0x688   : > { %v1407_v60 = vadd.f32 %v1406_v59, %v1399_v53 }
 0x68a   : > { %v1408_v61 = vmul.f32 0.7978846, %v1407_v60 }
 0x68c   : > { %2005 = vtanh.f32 %v1408_v61 }
 0x696   : > { %v2006_v62 = vpop.eup %2005 }
 0x697   : > { %v1410_v63 = vadd.f32 1.0, %v2006_v62 }
 0x699   : > { %v1411_v0 = vmul.f32 0.5, %v1410_v63 }
 0x69b   : > { %v1412_v1 = vmul.f32 %v1411_v0, %v1399_v53 }
 0x69d   : > { %v1413_v2 = vpack.c.bf16 %v1412_v1, %v1412_v1 }
 0x69f   : > { %1948 = vmatmul.mubr.bf16.vlgmr.msra.gmra.mrb[12].mxu0 %v1413_v2 }
 0x772   : > { %v1519_v5 = vpop.f32.mrb[12].mxu0 }
 0x773   : > { %v1520_v6 = vadd.f32 %v1807_v4, %v1519_v5  ;;  %v1949_v7 = vpop.f32.mrb[13].mxu0 }
 0x774   : > { %v1522_v8 = vpop.f32.mrb[14].mxu0 }
 0x775   : > { %v1525_v10 = vadd.f32 %v1520_v6, %v1336_v40  ;;  %v1950_v11 = vpop.f32.mrb[15].mxu0 }
 0x777   : > { %v1526_v12 = vpack.c.bf16 %v1525_v10, %v1525_v10 }
 0x779   : > { %1956 = vmatmul.mubr.msk.bf16.vlgmr.msra.gmra.mrb[20].mxu1 %vm956_vm2, %v1526_v12 }
 0x84c   : > { %v1587_v15 = vpop.f32.mrb[20].mxu1 }
 0x84d   : > { %v1588_v16 = vadd.f32 %v1816_v14, %v1587_v15  ;;  %v1957_v17 = vpop.f32.mrb[21].mxu1 }
 0x84e   : > { %v1590_v18 = vpop.f32.mrb[22].mxu1 }
 0x84f   : > { %v1958_v19 = vpop.f32.mrb[23].mxu1  ;;  %v1599_v20 = vsel %vm1598_vm3, %v1588_v16, -inf }
 0x850   : > { %1600 = vmax.xlane.f32.xlu1 %v1599_v20 }
 0x861   : > { %1614 = vperm.xlu1 %1975, %v1597_v22  }
 0x8dd   : > { %v1601_v23 = vpop.xlane.xlu1 %1600 }
 0x8de   : > { %v1602_v24 = vsub.f32 %v1588_v16, %v1601_v23 }
 0x8e0   : > { %v1603_v27 = vmul.f32 1.442695, %v1602_v24 }
 0x8e1   : > { %v1615_v28 = vpop.permute.xlu1 %1614 }
 0x8e2   : > { %2007 = vpow2.f32 %v1603_v27  ;;  %vm1616_vm5 = vcmp.eq.s32.totalorder %v1612_v26, %v1615_v28 }
 0x8e3   : > { %v1821_v29 = vsel %vm1616_vm5, 1.0, %v2020_v9 }
 0x8e4   : > { %v1619_v30 = vmul.f32 %v1821_v29, %v1588_v16 }
 0x8e6   : > { %v1620_v31 = vsel %vm1598_vm3, %v1619_v30, 0.0 }
 0x8e7   : > { %1621 = vadd.xlane.f32.xlu0 %v1620_v31 }
 0x8ec   : > { %v2008_v32 = vpop.eup %2007 }
 0x8ed   : > { %v1605_v33 = vsel %vm1598_vm3, %v2008_v32, 0.0 }
 0x8ee   : > { %1606 = vadd.xlane.f32.xlu1 %v1605_v33 }
 0x974   : > { %v1622_v13 = vpop.xlane.xlu0 %1621 }
 0x97b   : > { %v1607_v34 = vpop.xlane.xlu1 %1606 }
 0x97c   : > { %2009 = vlog2.f32 %v1607_v34 }
 0x986   : > { %v2010_v35 = vpop.eup %2009 }
 0x987   : > { %v1609_v36 = vmul.f32 0.6931472, %v2010_v35 }
 0x989   : > { %v1610_v37 = vadd.f32 %v1609_v36, %v1601_v23 }
 0x98b   : > { %v1623_v39 = vsub.f32 %v1610_v37, %v1622_v13 }
 0x98d   : > { %v1624_v40 = vmul.f32 %v1820_v38, %v1623_v39 }
 0x98f   : > { %v1626_v41 = vsel %vm1625_vm6, %v1624_v40, 0.0 }
 0x990   : > { %1627 = vadd.xlane.f32.xlu0 %v1626_v41 }
 0x994   : > { %1640 = vadd.xlane.f32.xlu0 %v1639_v42 }
 0xa1d   : > { %v1628_v43 = vpop.xlane.xlu0 %1627 }
 0xa1e   : > { %v1629_v25 = vrot.slane %v1628_v43, 4 }
 0xa20   : > { %v1630_v44 = vadd.f32 %v1629_v25, %v1628_v43 }
 0xa21   : > { %v1641_v45 = vpop.xlane.xlu0 %1640 }
 0xa22   : > { %v1631_v46 = vrot.slane %v1630_v44, 2  ;;  %v1642_v47 = vrot.slane %v1641_v45, 4 }
 0xa24   : > { %v1643_v48 = vadd.f32 %v1642_v47, %v1641_v45  ;;  %v1632_v49 = vadd.f32 %v1631_v46, %v1630_v44 }
 0xa26   : > { %v1644_v50 = vrot.slane %v1643_v48, 2  ;;  %v1633_v51 = vrot.slane %v1632_v49, 1 }
 0xa28   : > { %v1645_v9 = vadd.f32 %v1644_v50, %v1643_v48  ;;  %v1634_v52 = vadd.f32 %v1633_v51, %v1632_v49 }
 0xa2a   : > { %1959 = vpush %v1634_v52  ;;  %v1646_v53 = vrot.slane %v1645_v9, 1 }
 0xa2c   : > { %v1647_v54 = vadd.f32 %v1646_v53, %v1645_v9 }
 0xa2e   : > { %1961 = vpush %v1647_v54 }
 0xa5b   : > { %s1960_s1 = spop %1959 }
 0xa5c   : > { %v1636_v55 = vstv %s1960_s1 }
 0xa5d   : > { %1638 = vst.msk [vmem:[%s801_s4] sm:$0x1] %vm1637_vm7, %v1636_v55 }
 0xa5f   : > { %s1962_s29 = spop %1961 }
 0xa60   : > { %v1649_v56 = vstv %s1962_s29 }
 0xa61   : > { %1650 = vst.msk [vmem:[%s804_s2] sm:$0x1] %vm1637_vm7, %v1649_v56 }
 0xa62 PF: > { %s35_s5 = sadd.s32 1, %s2017_s5  }
 0xa63   : > { %p32_p4 = scmp.ge.s32.totalorder %s35_s5, 4  }
 0xa65   :  { %34 = sbr.rel (!%p32_p4) target bundleno = 10 (0xa), region = 166 }

</bundles_post_ra>
